<compile_context>
chip_gen: v7x
topology: tpu7x:2x2x1
jax: 0.10.0
libtpu: 0.0.40
codegen_flags: <defaults>
</compile_context>

<pallas_src>
import functools

import jax
import jax.numpy as jnp
from jax.experimental import pallas as pl
from jax.experimental.pallas import tpu as pltpu


def _vq_kernel(z_ref, neg2_embT_ref, emb_ref, e2_ref, zq_ref, idx_ref):
    # z_ref:         (1, D, T)  encoder-output tile, channels on sublanes
    # neg2_embT_ref: (K, D)     -2 * emb.T              (grid-invariant)
    # emb_ref:       (D, K)     codebook                (grid-invariant)
    # e2_ref:        (K, 1)     per-code squared norms  (grid-invariant)
    # zq_ref:        (1, D, T)  quantized output tile (NCHW layout)
    # idx_ref:       (1, 1, T)  int32 code indices (lane-dense row)
    z = z_ref[0]                                          # (D, T)
    neg2_embT = neg2_embT_ref[...]                        # (K, D)
    emb = emb_ref[...]                                    # (D, K)
    e2 = e2_ref[...]                                      # (K, 1)

    k = neg2_embT.shape[0]

    # Distance proxy ||e||^2 - 2 e.z (the per-column ||z||^2 term cannot
    # change the argmin -> dropped).  The -2 is pre-folded into neg2_embT,
    # so this is one MXU matmul plus a single (K, T) add pass.
    dist = e2 + jnp.dot(neg2_embT, z, preferred_element_type=jnp.float32)

    # First-minimum argmin over the codebook (sublane) axis, like torch.argmin.
    dmin = jnp.min(dist, axis=0, keepdims=True)                 # (1, T)
    iota_col = jax.lax.broadcasted_iota(jnp.int32, (k, 1), 0)   # (K, 1)
    idx = jnp.min(jnp.where(dist == dmin, iota_col, k), axis=0,
                  keepdims=True).astype(jnp.int32)              # (1, T)

    # Gather embeddings via one-hot matmul on the MXU: (D,K) @ (K,T) -> (D,T).
    onehot = (iota_col == idx).astype(emb.dtype)                # (K, T)
    zq = jnp.dot(emb, onehot, preferred_element_type=jnp.float32)

    # Forward value of z_e + (embeddings - z_e).detach() is just embeddings.
    zq_ref[0] = zq.astype(zq_ref.dtype)
    idx_ref[0] = idx


def _vmem_capacity_bytes():
    try:
        return int(pltpu.get_tpu_info().vmem_capacity_bytes)
    except Exception:
        return 64 * 1024 * 1024            # conservative (v7x-sized) fallback


def _plan(hw, d, k, batch):
    """Pick (tile_hw, vmem_limit_bytes) for the current TPU generation."""
    vmem_cap = _vmem_capacity_bytes()
    vmem_limit = min(int(vmem_cap * 0.75), vmem_cap - (8 << 20))
    vmem_limit = max(vmem_limit, 32 * 1024 * 1024)
    budget = int(vmem_limit * 0.8)

    # Fixed VMEM: double-buffered grid-invariant codebook blocks; the (K, 1)
    # e2 buffer is sublane/lane padded to (ceil(K/8)*8, 128) f32.
    fixed = 2 * (k * d * 4) + 2 * (d * k * 4)
    fixed += 2 * (((k + 7) // 8) * 8 * 128 * 4)
    # Per output column (lane): double-buffered z / zq / idx (8-sublane
    # padded) tiles plus ~6 (K, T)-shaped f32/i32 elementwise intermediates.
    per_lane = (2 * d + 2 * d + 2 * 8) * 4 + 6 * k * 4

    cap = max(128, (budget - fixed) // per_lane)
    cap = max(128, (cap // 128) * 128)
    cap = min(cap, 16384)          # diminishing returns past ~16K lanes

    if hw <= cap:
        tile = hw                  # one full-extent tile, no padding needed
    elif hw % 128 == 0:
        # Largest 128-multiple divisor of hw <= cap: tail-free, no pad/slice.
        tile = 128
        for t in range(128, cap + 1, 128):
            if hw % t == 0:
                tile = t
    else:
        tile = cap                 # rare ragged fallback: pad in the wrapper

    # v7x megacore: make sure the (B, n_tiles) grid offers >= 2 parallel
    # iterations when that is free (tile stays a 128 multiple, no padding).
    n_tiles = -(-hw // tile)
    if batch * n_tiles < 2 and tile % 256 == 0:
        tile //= 2
    return tile, vmem_limit


@functools.partial(jax.jit, static_argnames=("tile_hw", "vmem_limit"))
def _vq_pallas(z_e, emb, *, tile_hw, vmem_limit):
    B, D = z_e.shape[0], z_e.shape[1]
    spatial = z_e.shape[2:]
    K = emb.shape[1]

    HW = 1
    for s in spatial:
        HW *= int(s)

    n_tiles = pl.cdiv(HW, tile_hw)
    HW_pad = n_tiles * tile_hw

    # Contiguous reshape only -- no layout transpose in HBM.
    z3 = z_e.reshape(B, D, HW)
    if HW_pad != HW:
        # Rare fallback (HW not 128-aligned and larger than one tile).
        z3 = jnp.pad(z3, ((0, 0), (0, 0), (0, HW_pad - HW)))

    # Codebook-derived constants hoisted out of the grid loop.  O(K*D) once,
    # amortized over B * n_tiles tiles (not the "pre-scale inputs" pattern).
    neg2_emb_t = (-2.0 * emb).T                                  # (K, D)
    e2 = jnp.sum(emb * emb, axis=0)[:, None]                     # (K, 1)

    zq_out, idx_out = pl.pallas_call(
        _vq_kernel,
        out_shape=(
            jax.ShapeDtypeStruct((B, D, HW_pad), z_e.dtype),
            jax.ShapeDtypeStruct((B, 1, HW_pad), jnp.int32),
        ),
        grid_spec=pltpu.PrefetchScalarGridSpec(
            num_scalar_prefetch=0,
            grid=(B, n_tiles),
            in_specs=[
                pl.BlockSpec((1, D, tile_hw), lambda b, t: (b, 0, t)),
                pl.BlockSpec((K, D), lambda b, t: (0, 0)),
                pl.BlockSpec((D, K), lambda b, t: (0, 0)),
                pl.BlockSpec((K, 1), lambda b, t: (0, 0)),
            ],
            out_specs=[
                pl.BlockSpec((1, D, tile_hw), lambda b, t: (b, 0, t)),
                pl.BlockSpec((1, 1, tile_hw), lambda b, t: (b, 0, t)),
            ],
        ),
        compiler_params=pltpu.CompilerParams(
            dimension_semantics=("parallel", "parallel"),
            vmem_limit_bytes=vmem_limit,
        ),
    )(z3, neg2_emb_t, emb, e2)

    if HW_pad != HW:
        zq_out = zq_out[:, :, :HW]
        idx_out = idx_out[:, :, :HW]
    z_q = zq_out.reshape(z_e.shape)
    idx = idx_out.reshape((B,) + spatial)
    return z_q, None, idx


def vector_quantize(z_e, emb, tile_hw=None):
    """Eval-mode VectorQuantizerEMA.forward.

    z_e: (B, D, *spatial) float32; emb: (D, K) float32 codebook.
    Returns (z_q, None, idx) with z_q shaped like z_e and idx (B, *spatial).
    """
    assert z_e.shape[1] == emb.shape[0]
    B, D = int(z_e.shape[0]), int(z_e.shape[1])
    K = int(emb.shape[1])
    HW = 1
    for s in z_e.shape[2:]:
        HW *= int(s)

    planned_tile, vmem_limit = _plan(HW, D, K, B)
    if tile_hw is None:
        tile_hw = planned_tile
    return _vq_pallas(z_e, emb, tile_hw=int(tile_hw), vmem_limit=int(vmem_limit))


def _reference(z_e, emb):
    """Pure-JAX mirror of the torch forward (eval mode)."""
    B, D = z_e.shape[0], z_e.shape[1]
    spatial = z_e.shape[2:]
    perm = (0,) + tuple(range(2, z_e.ndim)) + (1,)
    z = jnp.transpose(z_e, perm).reshape(-1, D)
    dist = (jnp.sum(z ** 2, 1, keepdims=True) - 2.0 * z @ emb
            + jnp.sum(emb ** 2, 0, keepdims=True))
    idx = jnp.argmin(dist, axis=1)
    embeddings = emb.T[idx]
    zq = z + (embeddings - z)
    zq = zq.reshape((B,) + spatial + (D,))
    inv_perm = (0, z_e.ndim - 1) + tuple(range(1, z_e.ndim - 1))
    return jnp.transpose(zq, inv_perm), idx.reshape((B,) + spatial)


if __name__ == "__main__":
    # Shapes consistent with the module: B=2, embedding_dim=4, 16x16 grid,
    # codebook_size=128.
    key = jax.random.PRNGKey(0)
    k_emb, k_z, k_z2 = jax.random.split(key, 3)
    codebook_size = 128
    embedding_dim = 4

    # Deterministic parameter init (mirrors torch.randn(...) * 0.05 buffer).
    emb = jax.random.normal(k_emb, (embedding_dim, codebook_size),
                            dtype=jnp.float32) * 0.05
    z_e = jax.random.normal(k_z, (2, embedding_dim, 16, 16), dtype=jnp.float32)

    zq_ref, idx_ref = _reference(z_e, emb)

    # 1) Default planning (single lane-dense tile per batch element here).
    z_q, _, idx = vector_quantize(z_e, emb)
    jax.block_until_ready((z_q, idx))
    assert idx.shape == (2, 16, 16) and idx.dtype == jnp.int32
    assert jnp.array_equal(idx, idx_ref.astype(jnp.int32))
    assert jnp.allclose(z_q, zq_ref, atol=1e-5, rtol=1e-5)

    # 2) Forced multi-tile grid: exercises the (B, n_tiles) pipelined path.
    z_q2, _, idx2 = vector_quantize(z_e, emb, tile_hw=128)
    jax.block_until_ready((z_q2, idx2))
    assert jnp.array_equal(idx2, idx_ref.astype(jnp.int32))
    assert jnp.allclose(z_q2, zq_ref, atol=1e-5, rtol=1e-5)

    # 3) Non-128-aligned spatial extent: handled with one full-extent tile,
    #    no pad/slice HBM round trips.
    z_e3 = jax.random.normal(k_z2, (1, embedding_dim, 10, 10), dtype=jnp.float32)
    z_q3, _, idx3 = vector_quantize(z_e3, emb)
    jax.block_until_ready((z_q3, idx3))
    zq3_ref, idx3_ref = _reference(z_e3, emb)
    assert idx3.shape == (1, 10, 10)
    assert jnp.array_equal(idx3, idx3_ref.astype(jnp.int32))
    assert jnp.allclose(z_q3, zq3_ref, atol=1e-5, rtol=1e-5)

    print("KERNEL_OK")
</pallas_src>

<mosaic_0001>
module attributes {stable_mosaic.version = 11 : i64} {
  func.func @_vq_kernel(%arg0: i32, %arg1: i32, %arg2: memref<1x4x256xf32, #tpu.memory_space<vmem>>, %arg3: memref<128x4xf32, #tpu.memory_space<vmem>>, %arg4: memref<4x128xf32, #tpu.memory_space<vmem>>, %arg5: memref<128x1xf32, #tpu.memory_space<vmem>>, %arg6: memref<1x4x256xf32, #tpu.memory_space<vmem>>, %arg7: memref<1x1x256xi32, #tpu.memory_space<vmem>>) attributes {dimension_semantics = [#tpu.dimension_semantics<parallel>, #tpu.dimension_semantics<parallel>], iteration_bounds = array<i64: 2, 1>, scalar_prefetch = 0 : i64, scratch_operands = 0 : i64, tpu.core_type = #tpu.core_type<tc>, window_params = [{transform_indices = @transform_0, window_bounds = array<i64: 1, 4, 256>}, {pipeline_mode = #tpu.pipeline_mode<synchronous>, transform_indices = @transform_1, window_bounds = array<i64: 128, 4>}, {pipeline_mode = #tpu.pipeline_mode<synchronous>, transform_indices = @transform_2, window_bounds = array<i64: 4, 128>}, {pipeline_mode = #tpu.pipeline_mode<synchronous>, transform_indices = @transform_3, window_bounds = array<i64: 128, 1>}, {transform_indices = @transform_4, window_bounds = array<i64: 1, 4, 256>}, {transform_indices = @transform_5, window_bounds = array<i64: 1, 1, 256>}]} {
    %c0 = arith.constant 0 : index
    %c0_0 = arith.constant 0 : index
    %c0_1 = arith.constant 0 : index
    %0 = vector.load %arg2[%c0, %c0_0, %c0_1] : memref<1x4x256xf32, #tpu.memory_space<vmem>>, vector<1x4x256xf32>
    %1 = vector.shape_cast %0 : vector<1x4x256xf32> to vector<4x256xf32>
    %c0_2 = arith.constant 0 : index
    %c0_3 = arith.constant 0 : index
    %2 = vector.load %arg3[%c0_2, %c0_3] : memref<128x4xf32, #tpu.memory_space<vmem>>, vector<128x4xf32>
    %c0_4 = arith.constant 0 : index
    %c0_5 = arith.constant 0 : index
    %3 = vector.load %arg4[%c0_4, %c0_5] : memref<4x128xf32, #tpu.memory_space<vmem>>, vector<4x128xf32>
    %c0_6 = arith.constant 0 : index
    %c0_7 = arith.constant 0 : index
    %4 = vector.load %arg5[%c0_6, %c0_7] : memref<128x1xf32, #tpu.memory_space<vmem>>, vector<128x1xf32>
    %cst = arith.constant dense<0.000000e+00> : vector<128x256xf32>
    %5 = tpu.matmul %2, %1, %cst {dimension_numbers = #tpu.dot_dimension_numbers<[1], [0], [0], [1], [0, 0, 1, 1], [], []>} : vector<128x4xf32>, vector<4x256xf32>, vector<128x256xf32> -> vector<128x256xf32>
    %6 = vector.broadcast %4 : vector<128x1xf32> to vector<128x256xf32>
    %7 = arith.addf %6, %5 : vector<128x256xf32>
    %cst_8 = arith.constant dense<0x7F800000> : vector<256xf32>
    %8 = vector.multi_reduction <minimumf>, %7, %cst_8 [0] : vector<128x256xf32> to vector<256xf32>
    %9 = vector.shape_cast %8 : vector<256xf32> to vector<1x256xf32>
    %10 = tpu.iota {dimensions = array<i32: 0>} : vector<128x1xi32>
    %11 = vector.broadcast %9 : vector<1x256xf32> to vector<128x256xf32>
    %12 = arith.cmpf oeq, %7, %11 : vector<128x256xf32>
    %c128_i32 = arith.constant 128 : i32
    %13 = vector.shape_cast %10 : vector<128x1xi32> to vector<128x1xi32>
    %14 = vector.broadcast %13 : vector<128x1xi32> to vector<128x256xi32>
    %15 = vector.broadcast %c128_i32 : i32 to vector<128x256xi32>
    %16 = arith.select %12, %14, %15 : vector<128x256xi1>, vector<128x256xi32>
    %cst_9 = arith.constant dense<2147483647> : vector<256xi32>
    %17 = vector.multi_reduction <minsi>, %16, %cst_9 [0] : vector<128x256xi32> to vector<256xi32>
    %18 = vector.shape_cast %17 : vector<256xi32> to vector<1x256xi32>
    %19 = vector.broadcast %10 : vector<128x1xi32> to vector<128x256xi32>
    %20 = vector.broadcast %18 : vector<1x256xi32> to vector<128x256xi32>
    %21 = arith.cmpi eq, %19, %20 : vector<128x256xi32>
    %22 = arith.extui %21 : vector<128x256xi1> to vector<128x256xi32>
    %23 = arith.sitofp %22 : vector<128x256xi32> to vector<128x256xf32>
    %cst_10 = arith.constant dense<0.000000e+00> : vector<4x256xf32>
    %24 = tpu.matmul %3, %23, %cst_10 {dimension_numbers = #tpu.dot_dimension_numbers<[1], [0], [0], [1], [0, 0, 1, 1], [], []>} : vector<4x128xf32>, vector<128x256xf32>, vector<4x256xf32> -> vector<4x256xf32>
    %c0_11 = arith.constant 0 : index
    %c0_12 = arith.constant 0 : index
    %c0_13 = arith.constant 0 : index
    %25 = vector.load %arg6[%c0_11, %c0_12, %c0_13] : memref<1x4x256xf32, #tpu.memory_space<vmem>>, vector<1x4x256xf32>
    %26 = vector.shape_cast %25 : vector<1x4x256xf32> to vector<4x256xf32>
    %27 = vector.shape_cast %24 : vector<4x256xf32> to vector<1x4x256xf32>
    tpu.vector_store %arg6[%c0_11, %c0_12, %c0_13], %27 {strides = array<i32>} : memref<1x4x256xf32, #tpu.memory_space<vmem>>, vector<1x4x256xf32>,
    %c0_14 = arith.constant 0 : index
    %c0_15 = arith.constant 0 : index
    %c0_16 = arith.constant 0 : index
    %28 = vector.load %arg7[%c0_14, %c0_15, %c0_16] : memref<1x1x256xi32, #tpu.memory_space<vmem>>, vector<1x1x256xi32>
    %29 = vector.shape_cast %28 : vector<1x1x256xi32> to vector<1x256xi32>
    %30 = vector.shape_cast %18 : vector<1x256xi32> to vector<1x1x256xi32>
    tpu.vector_store %arg7[%c0_14, %c0_15, %c0_16], %30 {strides = array<i32>} : memref<1x1x256xi32, #tpu.memory_space<vmem>>, vector<1x1x256xi32>,
    return
  }
  func.func @transform_0(%arg0: i32, %arg1: i32) -> (i32, i32, i32) {
    %c0_i32 = arith.constant 0 : i32
    %c0_i32_0 = arith.constant 0 : i32
    return %arg0, %c0_i32, %arg1 : i32, i32, i32
  }
  func.func @transform_1(%arg0: i32, %arg1: i32) -> (i32, i32) {
    %c0_i32 = arith.constant 0 : i32
    %c0_i32_0 = arith.constant 0 : i32
    %c0_i32_1 = arith.constant 0 : i32
    return %c0_i32, %c0_i32_0 : i32, i32
  }
  func.func @transform_2(%arg0: i32, %arg1: i32) -> (i32, i32) {
    %c0_i32 = arith.constant 0 : i32
    %c0_i32_0 = arith.constant 0 : i32
    %c0_i32_1 = arith.constant 0 : i32
    return %c0_i32, %c0_i32_0 : i32, i32
  }
  func.func @transform_3(%arg0: i32, %arg1: i32) -> (i32, i32) {
    %c0_i32 = arith.constant 0 : i32
    %c0_i32_0 = arith.constant 0 : i32
    %c0_i32_1 = arith.constant 0 : i32
    return %c0_i32, %c0_i32_0 : i32, i32
  }
  func.func @transform_4(%arg0: i32, %arg1: i32) -> (i32, i32, i32) {
    %c0_i32 = arith.constant 0 : i32
    %c0_i32_0 = arith.constant 0 : i32
    return %arg0, %c0_i32, %arg1 : i32, i32, i32
  }
  func.func @transform_5(%arg0: i32, %arg1: i32) -> (i32, i32, i32) {
    %c0_i32 = arith.constant 0 : i32
    %c0_i32_0 = arith.constant 0 : i32
    return %arg0, %c0_i32, %arg1 : i32, i32, i32
  }
}

</mosaic_0001>

<bundles_post_ra>
// kernel: _vq_pallas.1
= control target key start
LH: loop header
LB: loop body
LE: loop exit
PB: predicated region body
PF: predicated region fallthrough
CT: control target
= control target key end

     0   :  { %s1390_s18 = smov 0   ;;  %s1392_s19 = smov 0   ;;  %s1978_s0 = inlined_call_operand.vmem [shape: f32[2,4,256], index: 0, kind: input, shape index: {}]   ;;  %s1979_s1 = inlined_call_operand.vmem [shape: f32[128,4], index: 1, kind: input, shape index: {}]   ;;  %s1980_s2 = inlined_call_operand.vmem [shape: f32[4,128], index: 2, kind: input, shape index: {}]   ;;  %s1981_s3 = inlined_call_operand.vmem [shape: f32[128,1], index: 3, kind: input, shape index: {}]   ;;  %s1982_s4 = inlined_call_operand.vmem [shape: f32[2,4,256], index: 4, kind: output, shape index: {0}]   ;;  %s1983_s5 = inlined_call_operand.vmem [shape: s32[2,1,256], index: 5, kind: output, shape index: {1}]  }
   0x1   :  { %s1394_s20 = smov 0  }
   0x2 LB: > { %s28_s21 = sadd.s32 1, %s1350_s19  ;;  %p1177_p0 = scmp.ge.s32.totalorder %s1354_s20, 1  ;;  %s1354_s20 = sphi %s1394_s20, %s16_s20   ;;  %s1350_s19 = sphi %s1392_s19, %s1993_s19   ;;  %s1346_s18 = sphi %s1390_s18, %s1992_s18  }
   0x3   : > { %p30_p1 = scmp.ge.s32.totalorder %s28_s21, 2  ;;  %p213_p2 = scmp.lt.s32.totalorder %s1354_s20, 3 }
   0x5   : > { %s1995_s21 = smov (%p30_p1, %s28_s21), 0  ;;  %p214_p3 = pnand %p1177_p0, %p213_p2 }
   0x6   : > { %p258_p4 = scmp.lt.s32.totalorder (!%p214_p3), %s1346_s18, 1  ;;  %v1356_v0 = vmov (!%p214_p3), 0.0   ;;  %v1357_v1 = vmov (!%p214_p3), 0   ;;  %v304_v2 = vld [vmem:[%s1981_s3] sm:$0xff] (!%p214_p3)  ;;  %vm371_vm0 = vcmask (!%p214_p3), 1043456   ;;  %v306_v4 = vld [vmem:[%s1981_s3 + $0x10] sm:$0xff] (!%p214_p3) }
   0x7   : > { %217 = sbr.rel (%p214_p3) target bundleno = 610 (0x262), region = 36  ;;  %440 = vmatprep.mubr.f32.mxu0 (!%p214_p3), %v1356_v0  ;;  %1010 = vmatprep.mubr.f32.mxu1 (!%p214_p3), %v1356_v0  ;;  %v305_v6 = vld [vmem:[%s1981_s3 + $0x8] sm:$0xff] (!%p214_p3)  ;;  %v287_v7 = vld [vmem:[%s1979_s1] sm:$0xff] (!%p214_p3)  ;;  %vm322_vm1 = vcmask (!%p214_p3), 31744   ;;  %v307_v8 = vld [vmem:[%s1981_s3 + $0x18] sm:$0xff] (!%p214_p3) }
   0x8   : > { %1329 = vset.pattern.permute.xlu0 (!%p214_p3), %v1357_v1  ;;  %1330 = vset.pattern.permute.xlu1 (!%p214_p3), %v1357_v1  ;;  %v308_v9 = vld [vmem:[%s1981_s3 + $0x20] sm:$0xff] (!%p214_p3)  ;;  %v288_v10 = vld [vmem:[%s1979_s1 + $0x8] sm:$0xff] (!%p214_p3)  ;;  %v310_v12 = vld [vmem:[%s1981_s3 + $0x30] sm:$0xff] (!%p214_p3) }
   0x9   : > { %539 = vperm.xlu0 (!%p214_p3), %1329, %v304_v2   ;;  %549 = vperm.xlu1 (!%p214_p3), %1330, %v306_v4   ;;  %v309_v11 = vld [vmem:[%s1981_s3 + $0x28] sm:$0xff] (!%p214_p3)  ;;  %v289_v13 = vld [vmem:[%s1979_s1 + $0x10] sm:$0xff] (!%p214_p3)  ;;  %v311_v14 = vld [vmem:[%s1981_s3 + $0x38] sm:$0xff] (!%p214_p3) }
   0xa   : > { %v312_v15 = vld [vmem:[%s1981_s3 + $0x40] sm:$0xff] (!%p214_p3)  ;;  %v290_v16 = vld [vmem:[%s1979_s1 + $0x18] sm:$0xff] (!%p214_p3)  ;;  %v313_v17 = vld [vmem:[%s1981_s3 + $0x48] sm:$0xff] (!%p214_p3) }
   0xb   : > { %v314_v18 = vld [vmem:[%s1981_s3 + $0x50] sm:$0xff] (!%p214_p3)  ;;  %v291_v19 = vld [vmem:[%s1979_s1 + $0x20] sm:$0xff] (!%p214_p3)  ;;  %v315_v20 = vld [vmem:[%s1981_s3 + $0x58] sm:$0xff] (!%p214_p3) }
   0xc   : > { %v316_v21 = vld [vmem:[%s1981_s3 + $0x60] sm:$0xff] (!%p214_p3)  ;;  %v292_v22 = vld [vmem:[%s1979_s1 + $0x28] sm:$0xff] (!%p214_p3)  ;;  %v318_v24 = vld [vmem:[%s1981_s3 + $0x70] sm:$0xff] (!%p214_p3) }
   0xd   : > { %544 = vperm.xlu0 (!%p214_p3), %1329, %v305_v6   ;;  %554 = vperm.xlu1 (!%p214_p3), %1330, %v307_v8   ;;  %v317_v23 = vld [vmem:[%s1981_s3 + $0x68] sm:$0xff] (!%p214_p3)  ;;  %v293_v25 = vld [vmem:[%s1979_s1 + $0x30] sm:$0xff] (!%p214_p3)  ;;  %v319_v26 = vld [vmem:[%s1981_s3 + $0x78] sm:$0xff] (!%p214_p3) }
   0xe   : > { %s1997_s18 = smov (!%p258_p4, %s1346_s18), 1  ;;  %v294_v27 = vld [vmem:[%s1979_s1 + $0x38] sm:$0xff]  ;;  %v295_v28 = vld [vmem:[%s1979_s1 + $0x40] sm:$0xff]  ;;  %v296_v29 = vld [vmem:[%s1979_s1 + $0x48] sm:$0xff] }
   0xf   : > { %s1267_s22 = sshll.u32 %s1997_s18, 3  ;;  %v297_v30 = vld [vmem:[%s1979_s1 + $0x50] sm:$0xff]  ;;  %v298_v31 = vld [vmem:[%s1979_s1 + $0x58] sm:$0xff]  ;;  %v299_v32 = vld [vmem:[%s1979_s1 + $0x60] sm:$0xff]  ;;  %s1182_s30 = sshll.u32 %s1997_s18, 1 }
  0x10   : > { %s265_s25 = scalar_lea.vmem %s1978_s0, %s1267_s22  ;;  %v300_v33 = vld [vmem:[%s1979_s1 + $0x68] sm:$0xff]  ;;  %v301_v34 = vld [vmem:[%s1979_s1 + $0x70] sm:$0xff]  ;;  %v302_v35 = vld [vmem:[%s1979_s1 + $0x78] sm:$0xff]  ;;  %s284_s8 = scalar_lea.vmem %s1983_s5, %s1182_s30 }
  0x11   : > { %v286_v3 = vld [vmem:[%s265_s25] sm:$0xff]  ;;  %559 = vperm.xlu0 %1329, %v308_v9   ;;  %564 = vperm.xlu1 %1330, %v309_v11   ;;  %s275_s13 = scalar_lea.vmem %s1982_s4, %s1267_s22 }
  0x12   : > { %v321_v5 = vcombine.high %v286_v3, %v286_v3 }
  0x14   : > { %1183 = vmatprep.subr.msk.mxu0 %vm371_vm0, %v321_v5 }
  0x15   : > { %1184 = vmatpush1.msk.msra.mxu0 %vm371_vm0, %v286_v3  ;;  %569 = vperm.xlu0 %1329, %v310_v12  }
  0x16   : > { %1185 = vmatmul.mubr.msk.f32.vlgmr.msra.gmra.mrb[0].mxu0 %vm322_vm1, %v287_v7  ;;  %574 = vperm.xlu1 %1330, %v311_v14  }
  0x17   : > { %446 = vmatprep.mubr.f32.mxu0 %v1356_v0 }
  0x19   : > { %579 = vperm.xlu0 %1329, %v312_v15  }
  0x1a   : > { %1186 = vmatmul.mubr.msk.f32.gmra.mrb[2].mxu0 %vm322_vm1, %v288_v10  ;;  %584 = vperm.xlu1 %1330, %v313_v17  }
  0x1b   : > { %452 = vmatprep.mubr.f32.mxu0 %v1356_v0 }
  0x1d   : > { %589 = vperm.xlu0 %1329, %v314_v18  }
  0x1e   : > { %1187 = vmatmul.mubr.msk.f32.gmra.mrb[4].mxu0 %vm322_vm1, %v289_v13  ;;  %594 = vperm.xlu1 %1330, %v315_v20  }
  0x1f   : > { %458 = vmatprep.mubr.f32.mxu0 %v1356_v0 }
  0x21   : > { %599 = vperm.xlu0 %1329, %v316_v21  }
  0x22   : > { %1188 = vmatmul.mubr.msk.f32.gmra.mrb[6].mxu0 %vm322_vm1, %v290_v16  ;;  %604 = vperm.xlu1 %1330, %v317_v23  }
  0x23   : > { %464 = vmatprep.mubr.f32.mxu0 %v1356_v0 }
  0x25   : > { %609 = vperm.xlu0 %1329, %v318_v24  }
  0x26   : > { %1189 = vmatmul.mubr.msk.f32.gmra.mrb[8].mxu0 %vm322_vm1, %v291_v19  ;;  %614 = vperm.xlu1 %1330, %v319_v26  }
  0x27   : > { %470 = vmatprep.mubr.f32.mxu0 %v1356_v0 }
  0x2a   : > { %1190 = vmatmul.mubr.msk.f32.gmra.mrb[10].mxu0 %vm322_vm1, %v292_v22 }
  0x2b   : > { %476 = vmatprep.mubr.f32.mxu0 %v1356_v0 }
  0x2e   : > { %1191 = vmatmul.mubr.msk.f32.gmra.mrb[12].mxu0 %vm322_vm1, %v293_v25 }
  0x2f   : > { %482 = vmatprep.mubr.f32.mxu0 %v1356_v0 }
  0x32   : > { %1192 = vmatmul.mubr.msk.f32.gmra.mrb[14].mxu0 %vm322_vm1, %v294_v27 }
  0x33   : > { %488 = vmatprep.mubr.f32.mxu0 %v1356_v0 }
  0x36   : > { %1193 = vmatmul.mubr.msk.f32.gmra.mrb[16].mxu0 %vm322_vm1, %v295_v28 }
  0x37   : > { %494 = vmatprep.mubr.f32.mxu0 %v1356_v0 }
  0x3a   : > { %1194 = vmatmul.mubr.msk.f32.gmra.mrb[18].mxu0 %vm322_vm1, %v296_v29 }
  0x3b   : > { %500 = vmatprep.mubr.f32.mxu0 %v1356_v0 }
  0x3e   : > { %1195 = vmatmul.mubr.msk.f32.gmra.mrb[20].mxu0 %vm322_vm1, %v297_v30 }
  0x3f   : > { %506 = vmatprep.mubr.f32.mxu0 %v1356_v0 }
  0x42   : > { %1196 = vmatmul.mubr.msk.f32.gmra.mrb[22].mxu0 %vm322_vm1, %v298_v31 }
  0x43   : > { %512 = vmatprep.mubr.f32.mxu0 %v1356_v0 }
  0x46   : > { %1197 = vmatmul.mubr.msk.f32.gmra.mrb[24].mxu0 %vm322_vm1, %v299_v32 }
  0x47   : > { %518 = vmatprep.mubr.f32.mxu0 %v1356_v0 }
  0x4a   : > { %1198 = vmatmul.mubr.msk.f32.gmra.mrb[26].mxu0 %vm322_vm1, %v300_v33 }
  0x4b   : > { %524 = vmatprep.mubr.f32.mxu0 %v1356_v0 }
  0x4e   : > { %1199 = vmatmul.mubr.msk.f32.gmra.mrb[28].mxu0 %vm322_vm1, %v301_v34 }
  0x4f   : > { %530 = vmatprep.mubr.f32.mxu0 %v1356_v0 }
  0x52   : > { %1200 = vmatmul.mubr.msk.f32.gmra.mrb[30].mxu0 %vm322_vm1, %v302_v35 }
  0x88   : > { %v540_v38 = vpop.permute.xlu0 %539  ;;  %v550_v41 = vpop.permute.xlu1 %549 }
  0x8c   : > { %v545_v47 = vpop.permute.xlu0 %544  ;;  %v555_v50 = vpop.permute.xlu1 %554 }
  0x90   : > { %v560_v59 = vpop.permute.xlu0 %559  ;;  %v565_v2 = vpop.permute.xlu1 %564 }
  0x94   : > { %v570_v9 = vpop.permute.xlu0 %569 }
  0x95   : > { %v575_v16 = vpop.permute.xlu1 %574 }
  0x98   : > { %v580_v23 = vpop.permute.xlu0 %579 }
  0x99   : > { %v585_v30 = vpop.permute.xlu1 %584 }
  0xe9   : > { %v442_v36 = vpop.f32.mrb[0].mxu0 }
  0xea   : > { %v444_v37 = vpop.f32.mrb[1].mxu0  ;;  %v1545_v43 = vadd.f32 %v540_v38, %v442_v36 }
  0xeb   : > { %v1549_v46 = vadd.f32 %v540_v38, %v444_v37  ;;  %v590_v37 = vpop.permute.xlu0 %589 }
  0xed   : > { %v448_v39 = vpop.f32.mrb[2].mxu0 }
  0xee   : > { %v450_v40 = vpop.f32.mrb[3].mxu0  ;;  %v1557_v53 = vadd.f32 %v545_v47, %v448_v39 }
  0xef   : > { %v1561_v56 = vadd.f32 %v545_v47, %v450_v40  ;;  %v595_v47 = vpop.permute.xlu1 %594 }
  0xf1   : > { %v454_v42 = vpop.f32.mrb[4].mxu0 }
  0xf2   : > { %v1547_v44 = vadd.f32 %v550_v41, %v454_v42  ;;  %v456_v45 = vpop.f32.mrb[5].mxu0 }
  0xf3   : > { %v1551_v48 = vadd.f32 %v550_v41, %v456_v45 }
  0xf4   : > { %v649_v49 = vmin.f32 %v1545_v43, %v1547_v44 }
  0xf5   : > { %v670_v51 = vmin.f32 %v1549_v46, %v1551_v48  ;;  %v460_v52 = vpop.f32.mrb[6].mxu0 }
  0xf6   : > { %v1559_v54 = vadd.f32 %v555_v50, %v460_v52  ;;  %v462_v55 = vpop.f32.mrb[7].mxu0 }
  0xf7   : > { %v1563_v57 = vadd.f32 %v555_v50, %v462_v55 }
  0xf8   : > { %v650_v58 = vmin.f32 %v1557_v53, %v1559_v54 }
  0xf9   : > { %v671_v60 = vmin.f32 %v1561_v56, %v1563_v57  ;;  %v466_v61 = vpop.f32.mrb[8].mxu0 }
  0xfa   : > { %v1569_v62 = vadd.f32 %v560_v59, %v466_v61  ;;  %v468_v63 = vpop.f32.mrb[9].mxu0 }
  0xfb   : > { %v1571_v0 = vadd.f32 %v560_v59, %v468_v63  ;;  %v600_v59 = vpop.permute.xlu0 %599 }
  0xfc   : > { %v651_v1 = vmin.f32 %v649_v49, %v1569_v62 }
  0xfd   : > { %v672_v3 = vmin.f32 %v670_v51, %v1571_v0  ;;  %v472_v4 = vpop.f32.mrb[10].mxu0 }
  0xfe   : > { %v1575_v5 = vadd.f32 %v565_v2, %v472_v4  ;;  %v474_v6 = vpop.f32.mrb[11].mxu0  ;;  %v605_v4 = vpop.permute.xlu1 %604 }
  0xff   : > { %v1577_v7 = vadd.f32 %v565_v2, %v474_v6 }
 0x100   : > { %v652_v8 = vmin.f32 %v650_v58, %v1575_v5 }
 0x101   : > { %v673_v10 = vmin.f32 %v671_v60, %v1577_v7  ;;  %v478_v11 = vpop.f32.mrb[12].mxu0 }
 0x102   : > { %v1581_v12 = vadd.f32 %v570_v9, %v478_v11  ;;  %v480_v13 = vpop.f32.mrb[13].mxu0 }
 0x103   : > { %v1583_v14 = vadd.f32 %v570_v9, %v480_v13 }
 0x104   : > { %v653_v15 = vmin.f32 %v651_v1, %v1581_v12 }
 0x105   : > { %v674_v17 = vmin.f32 %v672_v3, %v1583_v14  ;;  %v484_v18 = vpop.f32.mrb[14].mxu0 }
 0x106   : > { %v1587_v19 = vadd.f32 %v575_v16, %v484_v18  ;;  %v486_v20 = vpop.f32.mrb[15].mxu0 }
 0x107   : > { %v1589_v21 = vadd.f32 %v575_v16, %v486_v20 }
 0x108   : > { %v654_v22 = vmin.f32 %v652_v8, %v1587_v19 }
 0x109   : > { %v675_v24 = vmin.f32 %v673_v10, %v1589_v21  ;;  %v490_v25 = vpop.f32.mrb[16].mxu0 }
 0x10a   : > { %v1593_v26 = vadd.f32 %v580_v23, %v490_v25  ;;  %v492_v27 = vpop.f32.mrb[17].mxu0 }
 0x10b   : > { %v1595_v28 = vadd.f32 %v580_v23, %v492_v27 }
 0x10c   : > { %v655_v29 = vmin.f32 %v653_v15, %v1593_v26  ;;  %v610_v15 = vpop.permute.xlu0 %609 }
 0x10d   : > { %v676_v31 = vmin.f32 %v674_v17, %v1595_v28  ;;  %v496_v32 = vpop.f32.mrb[18].mxu0 }
 0x10e   : > { %v1599_v33 = vadd.f32 %v585_v30, %v496_v32  ;;  %v498_v34 = vpop.f32.mrb[19].mxu0 }
 0x10f   : > { %v1601_v35 = vadd.f32 %v585_v30, %v498_v34 }
 0x110   : > { %v656_v36 = vmin.f32 %v654_v22, %v1599_v33 }
 0x111   : > { %v677_v38 = vmin.f32 %v675_v24, %v1601_v35  ;;  %v502_v39 = vpop.f32.mrb[20].mxu0  ;;  %v615_v24 = vpop.permute.xlu1 %614 }
 0x112   : > { %v1605_v40 = vadd.f32 %v590_v37, %v502_v39  ;;  %v504_v41 = vpop.f32.mrb[21].mxu0  ;;  %v691_v39 = vlaneseq }
 0x113   : > { %v1607_v42 = vadd.f32 %v590_v37, %v504_v41 }
 0x114   : > { %v657_v45 = vmin.f32 %v655_v29, %v1605_v40 }
 0x115   : > { %v678_v49 = vmin.f32 %v676_v31, %v1607_v42  ;;  %v508_v50 = vpop.f32.mrb[22].mxu0 }
 0x116   : > { %v1611_v51 = vadd.f32 %v595_v47, %v508_v50  ;;  %v510_v52 = vpop.f32.mrb[23].mxu0  ;;  %v1642_v50 = vshrl.u32 %v691_v39, 7 }
 0x117   : > { %v1613_v55 = vadd.f32 %v595_v47, %v510_v52 }
 0x118   : > { %v658_v58 = vmin.f32 %v656_v36, %v1611_v51 }
 0x119   : > { %v679_v60 = vmin.f32 %v677_v38, %v1613_v55  ;;  %v514_v61 = vpop.f32.mrb[24].mxu0 }
 0x11a   : > { %v1617_v63 = vadd.f32 %v600_v59, %v514_v61  ;;  %v516_v1 = vpop.f32.mrb[25].mxu0  ;;  %v1645_v61 = vadd.s32 8, %v1642_v50 }
 0x11b   : > { %v1619_v2 = vadd.f32 %v600_v59, %v516_v1  ;;  %v1648_v1 = vadd.s32 16, %v1642_v50 }
 0x11c   : > { %v659_v3 = vmin.f32 %v657_v45, %v1617_v63 }
 0x11d   : > { %v680_v6 = vmin.f32 %v678_v49, %v1619_v2  ;;  %v520_v8 = vpop.f32.mrb[26].mxu0 }
 0x11e   : > { %v1623_v9 = vadd.f32 %v605_v4, %v520_v8  ;;  %v522_v10 = vpop.f32.mrb[27].mxu0  ;;  %v1660_v8 = vadd.s32 48, %v1642_v50 }
 0x11f   : > { %v1625_v11 = vadd.f32 %v605_v4, %v522_v10  ;;  %v1654_v4 = vadd.s32 32, %v1642_v50 }
 0x120   : > { %v660_v13 = vmin.f32 %v658_v58, %v1623_v9 }
 0x121   : > { %v681_v16 = vmin.f32 %v679_v60, %v1625_v11  ;;  %v526_v17 = vpop.f32.mrb[28].mxu0 }
 0x122   : > { %v1629_v18 = vadd.f32 %v610_v15, %v526_v17  ;;  %v528_v20 = vpop.f32.mrb[29].mxu0  ;;  %v1674_v17 = vadd.s32 80, %v1642_v50 }
 0x123   : > { %v1631_v22 = vadd.f32 %v610_v15, %v528_v20  ;;  %v1668_v15 = vadd.s32 64, %v1642_v50  ;;  %v1677_v20 = vadd.s32 88, %v1642_v50 }
 0x124   : > { %v661_v23 = vmin.f32 %v659_v3, %v1629_v18  ;;  %v1651_v3 = vadd.s32 24, %v1642_v50 }
 0x125   : > { %v682_v25 = vmin.f32 %v680_v6, %v1631_v22  ;;  %v532_v27 = vpop.f32.mrb[30].mxu0  ;;  %v1657_v6 = vadd.s32 40, %v1642_v50 }
 0x126   : > { %v1635_v29 = vadd.f32 %v615_v24, %v532_v27  ;;  %v534_v30 = vpop.f32.mrb[31].mxu0  ;;  %v1718_v27 = vadd.s32 112, %v1642_v50 }
 0x127   : > { %v1637_v31 = vadd.f32 %v615_v24, %v534_v30  ;;  %v1721_v30 = vadd.s32 120, %v1642_v50 }
 0x128   : > { %v662_v32 = vmin.f32 %v660_v13, %v1635_v29  ;;  %v1665_v13 = vadd.s32 56, %v1642_v50 }
 0x129   : > { %v683_v34 = vmin.f32 %v681_v16, %v1637_v31  ;;  %v1671_v16 = vadd.s32 72, %v1642_v50 }
 0x12a   : > { %v663_v36 = vmin.f32 %v661_v23, %v662_v32  ;;  %v1680_v23 = vadd.s32 96, %v1642_v50 }
 0x12b   : > { %v684_v37 = vmin.f32 %v682_v25, %v683_v34  ;;  %v1715_v25 = vadd.s32 104, %v1642_v50 }
 0x12c   : > { %v664_v38 = vrot.slane %v663_v36, 4 }
 0x12d   : > { %v685_v41 = vrot.slane %v684_v37, 4 }
 0x12e   : > { %v665_v45 = vmin.f32 %v663_v36, %v664_v38 }
 0x12f   : > { %v686_v47 = vmin.f32 %v684_v37, %v685_v41 }
 0x130   : > { %v666_v49 = vrot.slane %v665_v45, 2 }
 0x131   : > { %v687_v52 = vrot.slane %v686_v47, 2 }
 0x132   : > { %v667_v58 = vmin.f32 %v665_v45, %v666_v49 }
 0x133   : > { %v688_v59 = vmin.f32 %v686_v47, %v687_v52 }
 0x134   : > { %v668_v60 = vrot.slane %v667_v58, 1 }
 0x135   : > { %v689_v24 = vrot.slane %v688_v59, 1 }
 0x136   : > { %v1662_v10 = vmin.f32 %v667_v58, %v668_v60 }
 0x137   : > { %v1723_v32 = vmin.f32 %v688_v59, %v689_v24 }
 0x138   : > { %vm708_vm2 = vcmp.eq.f32.partialorder %v1545_v43, %v1662_v10  ;;  %vm710_vm3 = vcmp.eq.f32.partialorder %v1557_v53, %v1662_v10  ;;  %vm712_vm4 = vcmp.eq.f32.partialorder %v1547_v44, %v1662_v10  ;;  %vm714_vm5 = vcmp.eq.f32.partialorder %v1559_v54, %v1662_v10 }
 0x139   : > { %vm716_vm6 = vcmp.eq.f32.partialorder %v1569_v62, %v1662_v10  ;;  %vm718_vm7 = vcmp.eq.f32.partialorder %v1575_v5, %v1662_v10  ;;  %vm720_vm8 = vcmp.eq.f32.partialorder %v1581_v12, %v1662_v10  ;;  %vm722_vm9 = vcmp.eq.f32.partialorder %v1587_v19, %v1662_v10 }
 0x13a   : > { %vm724_vm10 = vcmp.eq.f32.partialorder %v1593_v26, %v1662_v10  ;;  %vm726_vm11 = vcmp.eq.f32.partialorder %v1599_v33, %v1662_v10  ;;  %vm728_vm12 = vcmp.eq.f32.partialorder %v1605_v40, %v1662_v10  ;;  %vm730_vm13 = vcmp.eq.f32.partialorder %v1611_v51, %v1662_v10 }
 0x13b   : > { %vm732_vm14 = vcmp.eq.f32.partialorder %v1617_v63, %v1662_v10  ;;  %vm734_vm15 = vcmp.eq.f32.partialorder %v1623_v9, %v1662_v10  ;;  %vm736_vm0 = vcmp.eq.f32.partialorder %v1629_v18, %v1662_v10  ;;  %vm738_vm1 = vcmp.eq.f32.partialorder %v1635_v29, %v1662_v10 }
 0x13c   : > { %v740_v34 = vsel %vm708_vm2, %v1642_v50, 128  ;;  %v742_v36 = vsel %vm710_vm3, %v1645_v61, 128  ;;  %v744_v37 = vsel %vm712_vm4, %v1648_v1, 128  ;;  %v746_v38 = vsel %vm714_vm5, %v1651_v3, 128 }
 0x13d   : > { %v748_v43 = vsel %vm716_vm6, %v1654_v4, 128  ;;  %v750_v53 = vsel %vm718_vm7, %v1657_v6, 128  ;;  %v752_v44 = vsel %vm720_vm8, %v1660_v8, 128  ;;  %v754_v54 = vsel %vm722_vm9, %v1665_v13, 128 }
 0x13e   : > { %v756_v62 = vsel %vm724_vm10, %v1668_v15, 128  ;;  %v758_v5 = vsel %vm726_vm11, %v1671_v16, 128  ;;  %v760_v12 = vsel %vm728_vm12, %v1674_v17, 128  ;;  %v762_v19 = vsel %vm730_vm13, %v1677_v20, 128 }
 0x13f   : > { %vm772_vm2 = vcmp.lt.s32.totalorder %v740_v34, %v744_v37  ;;  %vm774_vm3 = vcmp.lt.s32.totalorder %v742_v36, %v746_v38  ;;  %vm709_vm4 = vcmp.eq.f32.partialorder %v1549_v46, %v1723_v32  ;;  %vm711_vm5 = vcmp.eq.f32.partialorder %v1561_v56, %v1723_v32 }
 0x140   : > { %v773_v26 = vsel %vm772_vm2, %v740_v34, %v744_v37  ;;  %v775_v33 = vsel %vm774_vm3, %v742_v36, %v746_v38  ;;  %vm725_vm7 = vcmp.eq.f32.partialorder %v1595_v28, %v1723_v32  ;;  %vm733_vm13 = vcmp.eq.f32.partialorder %v1619_v2, %v1723_v32 }
 0x141   : > { %vm776_vm8 = vcmp.lt.s32.totalorder %v773_v26, %v748_v43  ;;  %vm778_vm9 = vcmp.lt.s32.totalorder %v775_v33, %v750_v53  ;;  %vm735_vm10 = vcmp.eq.f32.partialorder %v1625_v11, %v1723_v32  ;;  %v764_v52 = vsel %vm732_vm14, %v1680_v23, 128 }
 0x142   : > { %v777_v40 = vsel %vm776_vm8, %v773_v26, %v748_v43  ;;  %v779_v51 = vsel %vm778_vm9, %v775_v33, %v750_v53  ;;  %vm731_vm9 = vcmp.eq.f32.partialorder %v1613_v55, %v1723_v32  ;;  %v766_v58 = vsel %vm734_vm15, %v1715_v25, 128 }
 0x143   : > { %vm780_vm2 = vcmp.lt.s32.totalorder %v777_v40, %v752_v44  ;;  %vm782_vm3 = vcmp.lt.s32.totalorder %v779_v51, %v754_v54  ;;  %v768_v24 = vsel %vm736_vm0, %v1718_v27, 128  ;;  %v770_v34 = vsel %vm738_vm1, %v1721_v30, 128 }
 0x144   : > { %v781_v41 = vsel %vm780_vm2, %v777_v40, %v752_v44  ;;  %v783_v45 = vsel %vm782_vm3, %v779_v51, %v754_v54  ;;  %vm737_vm2 = vcmp.eq.f32.partialorder %v1631_v22, %v1723_v32  ;;  %vm739_vm3 = vcmp.eq.f32.partialorder %v1637_v31, %v1723_v32 }
 0x145   : > { %vm784_vm12 = vcmp.lt.s32.totalorder %v781_v41, %v756_v62  ;;  %vm786_vm11 = vcmp.lt.s32.totalorder %v783_v45, %v758_v5  ;;  %v741_v9 = vsel %vm709_vm4, %v1642_v50, 128  ;;  %v743_v18 = vsel %vm711_vm5, %v1645_v61, 128 }
 0x146   : > { %v785_v47 = vsel %vm784_vm12, %v781_v41, %v756_v62  ;;  %v787_v49 = vsel %vm786_vm11, %v783_v45, %v758_v5  ;;  %vm1984_vm0 = vcmp.eq.f32.partialorder %v1551_v48, %v1723_v32  ;;  %vm1985_vm1 = vcmp.eq.f32.partialorder %v1563_v57, %v1723_v32 }
 0x147   : > { %vm788_vm8 = vcmp.lt.s32.totalorder %v785_v47, %v760_v12  ;;  %vm790_vm6 = vcmp.lt.s32.totalorder %v787_v49, %v762_v19  ;;  %v745_v29 = vsel %vm1984_vm0, %v1648_v1, 128  ;;  %v747_v10 = vsel %vm1985_vm1, %v1651_v3, 128 }
 0x148   : > { %v789_v59 = vsel %vm788_vm8, %v785_v47, %v760_v12  ;;  %v791_v60 = vsel %vm790_vm6, %v787_v49, %v762_v19  ;;  %vm1986_vm5 = vcmp.eq.f32.partialorder %v1571_v0, %v1723_v32  ;;  %vm811_vm6 = vcmp.lt.s32.totalorder %v741_v9, %v745_v29 }
 0x149   : > { %vm792_vm11 = vcmp.lt.s32.totalorder %v789_v59, %v764_v52  ;;  %vm794_vm12 = vcmp.lt.s32.totalorder %v791_v60, %v766_v58  ;;  %v749_v56 = vsel %vm1986_vm5, %v1654_v4, 128  ;;  %vm813_vm8 = vcmp.lt.s32.totalorder %v743_v18, %v747_v10 }
 0x14a   : > { %v793_v63 = vsel %vm792_vm11, %v789_v59, %v764_v52  ;;  %v795_v36 = vsel %vm794_vm12, %v791_v60, %v766_v58  ;;  %vm1987_vm11 = vcmp.eq.f32.partialorder %v1577_v7, %v1723_v32  ;;  %v812_v53 = vsel %vm811_vm6, %v741_v9, %v745_v29 }
 0x14b   : > { %vm796_vm14 = vcmp.lt.s32.totalorder %v793_v63, %v768_v24  ;;  %vm798_vm15 = vcmp.lt.s32.totalorder %v795_v36, %v770_v34  ;;  %v751_v48 = vsel %vm1987_vm11, %v1657_v6, 128  ;;  %v814_v57 = vsel %vm813_vm8, %v743_v18, %v747_v10 }
 0x14c   : > { %v797_v37 = vsel %vm796_vm14, %v793_v63, %v768_v24  ;;  %v799_v46 = vsel %vm798_vm15, %v795_v36, %v770_v34  ;;  %vm1988_vm12 = vcmp.eq.f32.partialorder %v1583_v14, %v1723_v32  ;;  %vm815_vm14 = vcmp.lt.s32.totalorder %v812_v53, %v749_v56 }
 0x14d   : > { %vm800_vm4 = vcmp.lt.s32.totalorder %v797_v37, %v799_v46  ;;  %v753_v44 = vsel %vm1988_vm12, %v1660_v8, 128  ;;  %vm817_vm15 = vcmp.lt.s32.totalorder %v814_v57, %v751_v48  ;;  %vm1989_vm1 = vcmp.eq.f32.partialorder %v1589_v21, %v1723_v32 }
 0x14e   : > { %v801_v38 = vsel %vm800_vm4, %v797_v37, %v799_v46  ;;  %v755_v0 = vsel %vm1989_vm1, %v1665_v13, 128  ;;  %v816_v54 = vsel %vm815_vm14, %v812_v53, %v749_v56  ;;  %v818_v62 = vsel %vm817_vm15, %v814_v57, %v751_v48 }
 0x14f   : > { %v802_v43 = vrot.slane %v801_v38, 4  ;;  %vm819_vm4 = vcmp.lt.s32.totalorder %v816_v54, %v753_v44  ;;  %vm821_vm5 = vcmp.lt.s32.totalorder %v818_v62, %v755_v0  ;;  %v757_v7 = vsel %vm725_vm7, %v1668_v15, 128 }
 0x150   : > { %vm1990_vm6 = vcmp.eq.f32.partialorder %v1601_v35, %v1723_v32  ;;  %v820_v12 = vsel %vm819_vm4, %v816_v54, %v753_v44  ;;  %v822_v19 = vsel %vm821_vm5, %v818_v62, %v755_v0  ;;  %vm1991_vm8 = vcmp.eq.f32.partialorder %v1607_v42, %v1723_v32 }
 0x151   : > { %vm803_vm0 = vcmp.lt.s32.totalorder %v801_v38, %v802_v43  ;;  %v759_v14 = vsel %vm1990_vm6, %v1671_v16, 128  ;;  %v761_v21 = vsel %vm1991_vm8, %v1674_v17, 128  ;;  %vm823_vm11 = vcmp.lt.s32.totalorder %v820_v12, %v757_v7 }
 0x152   : > { %v804_v5 = vsel %vm803_vm0, %v801_v38, %v802_v43  ;;  %vm825_vm12 = vcmp.lt.s32.totalorder %v822_v19, %v759_v14  ;;  %v763_v28 = vsel %vm731_vm9, %v1677_v20, 128  ;;  %v824_v33 = vsel %vm823_vm11, %v820_v12, %v757_v7 }
 0x153   : > { %v805_v26 = vrot.slane %v804_v5, 2  ;;  %v826_v40 = vsel %vm825_vm12, %v822_v19, %v759_v14  ;;  %vm827_vm7 = vcmp.lt.s32.totalorder %v824_v33, %v761_v21  ;;  %v765_v35 = vsel %vm733_vm13, %v1680_v23, 128 }
 0x154   : > { %vm829_vm14 = vcmp.lt.s32.totalorder %v826_v40, %v763_v28  ;;  %v767_v42 = vsel %vm735_vm10, %v1715_v25, 128  ;;  %v828_v51 = vsel %vm827_vm7, %v824_v33, %v761_v21  ;;  %v769_v55 = vsel %vm737_vm2, %v1718_v27, 128 }
 0x155   : > { %v830_v41 = vsel %vm829_vm14, %v826_v40, %v763_v28  ;;  %vm831_vm9 = vcmp.lt.s32.totalorder %v828_v51, %v765_v35  ;;  %vm806_vm0 = vcmp.lt.s32.totalorder %v804_v5, %v805_v26  ;;  %v771_v2 = vsel %vm739_vm3, %v1721_v30, 128 }
 0x156   : > { %vm833_vm15 = vcmp.lt.s32.totalorder %v830_v41, %v767_v42  ;;  %v832_v45 = vsel %vm831_vm9, %v828_v51, %v765_v35  ;;  %v807_v52 = vsel %vm806_vm0, %v804_v5, %v805_v26  ;;  %v1358_v60 = vmov 1966171168  }
 0x157   : > { %v834_v47 = vsel %vm833_vm15, %v830_v41, %v767_v42  ;;  %vm835_vm13 = vcmp.lt.s32.totalorder %v832_v45, %v769_v55  ;;  %v808_v22 = vrot.slane %v807_v52, 1  ;;  %v1024_v24 = vunpack.c.l.s4 %v1358_v60 }
 0x158   : > { %vm837_vm1 = vcmp.lt.s32.totalorder %v834_v47, %v771_v2  ;;  %v836_v11 = vsel %vm835_vm13, %v832_v45, %v769_v55  ;;  %v1359_v46 = vmov 1.0|1.0   ;;  %vm1039_vm0 = vcmp.lt.s32.totalorder %v691_v39, 256  ;;  %v303_v39 = vld [vmem:[%s1980_s2] sm:$0xf] }
 0x159   : > { %v838_v49 = vsel %vm837_vm1, %v834_v47, %v771_v2  ;;  %vm809_vm4 = vcmp.lt.s32.totalorder %v807_v52, %v808_v22  ;;  %v1025_v31 = vunpack.c.0.s8 %v1024_v24 }
 0x15a   : > { %vm839_vm10 = vcmp.lt.s32.totalorder %v836_v11, %v838_v49  ;;  %v1885_v36 = vsel %vm809_vm4, %v807_v52, %v808_v22 }
 0x15b   : > { %v840_v58 = vsel %vm839_vm10, %v836_v11, %v838_v49  ;;  %v1028_v18 = vsub.s32 %v1025_v31, %v1642_v50  ;;  %vm850_vm6 = vcmp.eq.s32.totalorder %v1642_v50, %v1885_v36  ;;  %vm852_vm8 = vcmp.eq.s32.totalorder %v1645_v61, %v1885_v36 }
 0x15c   : > { %v841_v59 = vrot.slane %v840_v58, 4  ;;  %vm1271_vm15 = vmpackc.low %vm852_vm8, %vm850_vm6  ;;  %vm854_vm1 = vcmp.eq.s32.totalorder %v1648_v1, %v1885_v36  ;;  %vm856_vm10 = vcmp.eq.s32.totalorder %v1651_v3, %v1885_v36  ;;  %vm858_vm6 = vcmp.eq.s32.totalorder %v1654_v4, %v1885_v36 }
 0x15d   : > { %vm860_vm8 = vcmp.eq.s32.totalorder %v1657_v6, %v1885_v36 }
 0x15e   : > { %vm842_vm2 = vcmp.lt.s32.totalorder %v840_v58, %v841_v59 }
 0x15f   : > { %v843_v34 = vsel %vm842_vm2, %v840_v58, %v841_v59 }
 0x160   : > { %v844_v63 = vrot.slane %v843_v34, 2 }
 0x162   : > { %vm845_vm5 = vcmp.lt.s32.totalorder %v843_v34, %v844_v63 }
 0x163   : > { %v846_v32 = vsel %vm845_vm5, %v843_v34, %v844_v63  ;;  %vm1275_vm5 = vmpackc.low %vm856_vm10, %vm854_vm1 }
 0x164   : > { %v847_v9 = vrot.slane %v846_v32, 1 }
 0x166   : > { %vm848_vm3 = vcmp.lt.s32.totalorder %v846_v32, %v847_v9 }
 0x167   : > { %v1888_v29 = vsel %vm848_vm3, %v846_v32, %v847_v9 }
 0x168   : > { %v1022_v10 = vcombine.low %v1885_v36, %v1888_v29  ;;  %vm851_vm11 = vcmp.eq.s32.totalorder %v1642_v50, %v1888_v29  ;;  %vm853_vm12 = vcmp.eq.s32.totalorder %v1645_v61, %v1888_v29  ;;  %vm855_vm7 = vcmp.eq.s32.totalorder %v1648_v1, %v1888_v29 }
 0x169   : > { %vm1269_vm14 = vmpackc.low %vm853_vm12, %vm851_vm11  ;;  %vm857_vm9 = vcmp.eq.s32.totalorder %v1651_v3, %v1888_v29  ;;  %vm859_vm2 = vcmp.eq.s32.totalorder %v1654_v4, %v1888_v29  ;;  %vm861_vm4 = vcmp.eq.s32.totalorder %v1657_v6, %v1888_v29  ;;  %vm863_vm11 = vcmp.eq.s32.totalorder %v1660_v8, %v1888_v29 }
 0x16a   : > { %v1029_v37 = vrot.slane %v1022_v10, %v1028_v18  ;;  %1270 = vmatprep.subr.msk.bf16.mxu1 %vm1269_vm14, %v1359_v46  ;;  %vm1273_vm13 = vmpackc.low %vm857_vm9, %vm855_vm7  ;;  %vm865_vm12 = vcmp.eq.s32.totalorder %v1665_v13, %v1888_v29  ;;  %vm862_vm9 = vcmp.eq.s32.totalorder %v1660_v8, %v1885_v36 }
 0x16b   : > { %1272 = vmatpush1.bf16.msk.msra.mxu1 %vm1271_vm15, %v1359_v46  ;;  %vm1277_vm3 = vmpackc.low %vm861_vm4, %vm859_vm2  ;;  %vm864_vm15 = vcmp.eq.s32.totalorder %v1665_v13, %v1885_v36  ;;  %vm866_vm2 = vcmp.eq.s32.totalorder %v1668_v15, %v1885_v36  ;;  %vm868_vm4 = vcmp.eq.s32.totalorder %v1671_v16, %v1885_v36 }
 0x16c   : > { %v1036_v50 = vrot.slane %v1029_v37, %v1028_v18  ;;  %1274 = vmatprep.subr.msk.bf16.mxu1 %vm1273_vm13, %v1359_v46  ;;  %vm1279_vm7 = vmpackc.low %vm860_vm8, %vm858_vm6  ;;  %vm869_vm13 = vcmp.eq.s32.totalorder %v1671_v16, %v1888_v29 }
 0x16d   : > { %vm1281_vm14 = vmpackc.low %vm865_vm12, %vm863_vm11  ;;  %vm870_vm11 = vcmp.eq.s32.totalorder %v1674_v17, %v1885_v36  ;;  %vm872_vm12 = vcmp.eq.s32.totalorder %v1677_v20, %v1885_v36 }
 0x16e   : > { %1041 = vst.msk [vmem:[%s284_s8] sm:$0x3] %vm1039_vm0, %v1036_v50  ;;  %vm867_vm0 = vcmp.eq.s32.totalorder %v1668_v15, %v1888_v29  ;;  %vm1283_vm1 = vmpackc.low %vm864_vm15, %vm862_vm9 }
 0x16f   : > { %1276 = vmatpush1.bf16.msk.msra.mxu1 %vm1275_vm5, %v1359_v46  ;;  %vm1285_vm10 = vmpackc.low %vm869_vm13, %vm867_vm0  ;;  %vm871_vm5 = vcmp.eq.s32.totalorder %v1674_v17, %v1888_v29  ;;  %vm874_vm0 = vcmp.eq.s32.totalorder %v1680_v23, %v1885_v36  ;;  %vm876_vm13 = vcmp.eq.s32.totalorder %v1715_v25, %v1885_v36 }
 0x170   : > { %1278 = vmatprep.subr.msk.bf16.mxu1 %vm1277_vm3, %v1359_v46  ;;  %vm873_vm3 = vcmp.eq.s32.totalorder %v1677_v20, %v1888_v29  ;;  %vm1287_vm6 = vmpackc.low %vm868_vm4, %vm866_vm2 }
 0x171   : > { %vm1289_vm8 = vmpackc.low %vm873_vm3, %vm871_vm5  ;;  %vm878_vm5 = vcmp.eq.s32.totalorder %v1718_v27, %v1885_v36  ;;  %vm880_vm3 = vcmp.eq.s32.totalorder %v1721_v30, %v1885_v36 }
 0x172   : > { %vm1291_vm9 = vmpackc.low %vm872_vm12, %vm870_vm11 }
 0x173   : > { %1280 = vmatpush1.bf16.msk.msra.mxu1 %vm1279_vm7, %v1359_v46  ;;  %vm875_vm7 = vcmp.eq.s32.totalorder %v1680_v23, %v1888_v29  ;;  %vm1295_vm2 = vmpackc.low %vm876_vm13, %vm874_vm0 }
 0x174   : > { %1282 = vmatprep.subr.msk.bf16.mxu1 %vm1281_vm14, %v1359_v46  ;;  %vm877_vm14 = vcmp.eq.s32.totalorder %v1715_v25, %v1888_v29 }
 0x175   : > { %vm1293_vm15 = vmpackc.low %vm877_vm14, %vm875_vm7 }
 0x177   : > { %1284 = vmatpush1.bf16.msk.msra.mxu1 %vm1283_vm1, %v1359_v46  ;;  %vm879_vm1 = vcmp.eq.s32.totalorder %v1718_v27, %v1888_v29 }
 0x178   : > { %1286 = vmatprep.subr.msk.bf16.mxu1 %vm1285_vm10, %v1359_v46  ;;  %vm881_vm10 = vcmp.eq.s32.totalorder %v1721_v30, %v1888_v29 }
 0x179   : > { %vm1297_vm4 = vmpackc.low %vm881_vm10, %vm879_vm1 }
 0x17b   : > { %1288 = vmatpush1.bf16.msk.msra.mxu1 %vm1287_vm6, %v1359_v46  ;;  %vm1299_vm6 = vmpackc.low %vm880_vm3, %vm878_vm5 }
 0x17c   : > { %1290 = vmatprep.subr.msk.bf16.mxu1 %vm1289_vm8, %v1359_v46 }
 0x17f   : > { %1292 = vmatpush1.bf16.msk.msra.mxu1 %vm1291_vm9, %v1359_v46 }
 0x180   : > { %1294 = vmatprep.subr.msk.bf16.mxu1 %vm1293_vm15, %v1359_v46 }
 0x183   : > { %1296 = vmatpush1.bf16.msk.msra.mxu1 %vm1295_vm2, %v1359_v46 }
 0x184   : > { %1298 = vmatprep.subr.msk.bf16.mxu1 %vm1297_vm4, %v1359_v46 }
 0x187   : > { %1300 = vmatpush1.bf16.msk.msra.mxu1 %vm1299_vm6, %v1359_v46 }
 0x18a   : > { %1011 = vmatmul.mubr.f32.vlgmr.msra.gmra.mrb[0].mxu1 %v303_v39 }
 0x25d   : > { %v1012_v61 = vpop.f32.mrb[0].mxu1 }
 0x25e   : > { %v1014_v1 = vpop.f32.mrb[1].mxu1 }
 0x25f   : > { %v1019_v3 = vcombine.low %v1012_v61, %v1014_v1 }
 0x261   : > { %1021 = vst [vmem:[%s275_s13] sm:$0xff] %v1019_v3 }
 0x262 PF: > { %s16_s20 = sadd.s32 1, %s1354_s20   ;;  %s1992_s18 = smov %s1350_s19 }
 0x263   : > { %p13_p5 = scmp.ge.s32.totalorder %s16_s20, 4   ;;  %s1993_s19 = smov %s1995_s21 }
 0x265   :  { %15 = sbr.rel (!%p13_p5) target bundleno = 2 (0x2), region = 78 }

</bundles_post_ra>
